<compile_context>
chip_gen: v7x
topology: tpu7x:2x2x1
jax: 0.10.0
libtpu: 0.0.40
codegen_flags: <defaults>
</compile_context>

<pallas_src>
import jax
import jax.numpy as jnp
from jax.experimental import pallas as pl
from jax.experimental.pallas import tpu as pltpu


def _round_up(x, m):
    return ((x + m - 1) // m) * m


def _fc_relu_kernel(x_ref, w_ref, b_ref, o_ref):
    # x_ref: (TR, 3P)   w_ref: (3P, P*D)   b_ref: (1, P*D)   o_ref: (TR, P*D)
    x = x_ref[...].astype(jnp.float32)               # mirrors .to(torch.float32)
    y = jnp.dot(x, w_ref[...], preferred_element_type=jnp.float32) + b_ref[...]
    o_ref[...] = jnp.maximum(y, 0.0).astype(o_ref.dtype)


def _vmem_budget_bytes():
    """Usable scoped-VMEM budget, generation aware (~64 MiB on v5e/v6e,
    ~48 MiB on v7x whose per-TC VMEM is only 64 MiB)."""
    cap = 64 * 1024 * 1024            # conservative fallback = v7x VMEM / TC
    try:
        info = pltpu.get_tpu_info()
        c = getattr(info, "vmem_capacity_bytes", None)
        if c:
            cap = int(c)
    except Exception:
        pass
    return min((cap * 3) // 4, 64 * 1024 * 1024)


def _choose_pack_factor(D, M):
    """Row-packing factor P: output tile is P*D lanes wide (multiple of 128 ->
    unmasked stores) while keeping K2 = 3P modest.  Prefer P dividing M so the
    wrapper needs no pad / output slice."""
    if D >= 128 or 128 % D != 0:
        return 1                      # full-D (or awkward-D) block; no packing.
    base = 128 // D                   # smallest P giving 128-lane-aligned stores
    p_cap = min(512 // D, max(base, (128 // 3 // base) * base))  # keep 3P <~ 128
    p_cap = max(p_cap, base)
    p = p_cap
    while p >= base:                  # largest multiple of `base` dividing M
        if M % p == 0:
            return p
        p -= base
    return p_cap                      # nothing divides M -> tiny pad + slice.


def user_instant_interest_forward(x_global, weight, bias, *, block_rows=8192,
                                  out_dtype=jnp.float32):
    """x_global: (B, S, 3); weight: (3, D) (transposed vs. PyTorch); bias: (D,).

    Returns (B, S, D) in `out_dtype` (float32 by default, matching PyTorch).
    """
    B, S, K = x_global.shape
    assert K == 3, "UserInstantInterestModel expects last dim == 3"
    D = weight.shape[1]
    M = B * S
    osize = jnp.dtype(out_dtype).itemsize

    P = _choose_pack_factor(D, M)
    K2 = K * P                        # packed contraction width (e.g. 48 for D=32)
    N2 = P * D                        # packed output width (multiple of 128 when P>1)

    m_pad = _round_up(M, P)
    mp = m_pad // P                   # number of packed rows

    x_flat = x_global.reshape(M, K)
    if m_pad != M:                    # rare: no candidate P divides M
        x_flat = jnp.pad(x_flat, ((0, m_pad - M), (0, 0)))
    x2 = x_flat.reshape(mp, K2)       # zero-cost row-major reshape

    # Block-diagonal weight so that
    #   out2[r, D*j + d] = sum_k x2[r, 3*j + k] * w[k, d] + b[d]
    w2 = jnp.kron(jnp.eye(P, dtype=jnp.float32), weight.astype(jnp.float32))
    b2 = jnp.tile(bias.astype(jnp.float32), P).reshape(1, N2)

    # ---- tile size from the VMEM budget (double-buffered in + out tiles) ----
    budget = _vmem_budget_bytes()
    lane_in = _round_up(K2, 128)      # lane-padded widths as held in VMEM/vregs
    lane_out = _round_up(N2, 128)
    per_row = 2 * (lane_in * x2.dtype.itemsize + lane_out * osize)
    resident = _round_up(K2, 8) * lane_out * 4 + lane_out * 4    # weight + bias
    headroom = 2 * 1024 * 1024
    tr_max = max(8, (budget - resident - headroom) // per_row)
    tr = min(block_rows, tr_max)
    tr = max(8, (tr // 8) * 8)        # sublane-aligned tile rows (mult of 8)
    if tr >= mp:
        tr = mp                       # single block == full array extent (allowed)
    grid = (pl.cdiv(mp, tr),)         # partial final block handled by Pallas

    vmem_need = tr * per_row + resident + headroom
    vmem_limit = min(max(int(vmem_need), 32 * 1024 * 1024), int(budget))

    # Accurate advisory cost: the block-diagonal matmul actually issued to the
    # MXU is 2*mp*K2*N2 flops (a factor P above the logical 2*M*3*D).
    cost = pl.CostEstimate(
        flops=2 * mp * K2 * N2 + mp * N2,
        transcendentals=0,
        bytes_accessed=(mp * K2 * x2.dtype.itemsize
                        + int(w2.size) * 4 + int(b2.size) * 4
                        + mp * N2 * osize),
    )

    out2 = pl.pallas_call(
        _fc_relu_kernel,
        out_shape=jax.ShapeDtypeStruct((mp, N2), out_dtype),
        grid=grid,
        in_specs=[
            pl.BlockSpec((tr, K2), lambda i: (i, 0)),    # streamed row tiles
            pl.BlockSpec((K2, N2), lambda i: (0, 0)),    # resident weight
            pl.BlockSpec((1, N2), lambda i: (0, 0)),     # resident bias
        ],
        out_specs=pl.BlockSpec((tr, N2), lambda i: (i, 0)),
        compiler_params=pltpu.CompilerParams(
            # TODO(synk): verify on a v7x trace that this 1-D "parallel" axis is
            # actually sharded across both TensorCores; if not, add an explicit
            # leading core axis of size 2.
            dimension_semantics=("parallel",),
            vmem_limit_bytes=vmem_limit,
        ),
        cost_estimate=cost,
    )(x2, w2, b2)

    out_flat = out2.reshape(m_pad, D)                 # zero-cost reshape
    if m_pad != M:
        out_flat = out_flat[:M]                       # only on the rare pad path
    return out_flat.reshape(B, S, D)


def init_params(key, output_dim, in_features=3):
    """Deterministic init mimicking nn.Linear default (uniform +/- 1/sqrt(fan_in))."""
    kw, kb = jax.random.split(key)
    bound = 1.0 / jnp.sqrt(float(in_features))
    # PyTorch stores weight as (out, in); we keep the transposed (in, out) layout.
    weight = jax.random.uniform(kw, (in_features, output_dim), jnp.float32,
                                minval=-bound, maxval=bound)
    bias = jax.random.uniform(kb, (output_dim,), jnp.float32,
                              minval=-bound, maxval=bound)
    return weight, bias


def _reference(x_global, weight, bias):
    # Exact-f32 VPU-style reference (avoids MXU precision ambiguity).
    x = x_global.astype(jnp.float32)
    y = (x[..., 0:1] * weight[0] + x[..., 1:2] * weight[1]
         + x[..., 2:3] * weight[2] + bias)
    return jnp.maximum(y, 0.0)


if __name__ == "__main__":
    key = jax.random.PRNGKey(0)
    k_x, k_p = jax.random.split(key)

    B, S, D = 2, 8, 32                       # batch=2, seq=8, output_dim=32
    x_global = jax.random.normal(k_x, (B, S, 3), dtype=jnp.float32)
    weight, bias = init_params(k_p, D)

    out = jax.block_until_ready(user_instant_interest_forward(x_global, weight, bias))
    ref = _reference(x_global, weight, bias)
    assert out.shape == (B, S, D)
    assert jnp.allclose(out, ref, atol=1e-4, rtol=1e-4)

    # Multi-tile grid + partial final block, no pad/slice (16 divides 1200).
    B2, S2 = 4, 300
    x_big = jax.random.normal(jax.random.PRNGKey(1), (B2, S2, 3), dtype=jnp.float32)
    out_big = jax.block_until_ready(
        user_instant_interest_forward(x_big, weight, bias, block_rows=64))
    ref_big = _reference(x_big, weight, bias)
    assert out_big.shape == (B2, S2, D)
    assert jnp.allclose(out_big, ref_big, atol=1e-4, rtol=1e-4)

    # Rare fallback path: M=13 is divisible by no packing candidate -> pad+slice.
    B3, S3 = 1, 13
    x_odd = jax.random.normal(jax.random.PRNGKey(2), (B3, S3, 3), dtype=jnp.float32)
    out_odd = jax.block_until_ready(
        user_instant_interest_forward(x_odd, weight, bias))
    ref_odd = _reference(x_odd, weight, bias)
    assert out_odd.shape == (B3, S3, D)
    assert jnp.allclose(out_odd, ref_odd, atol=1e-4, rtol=1e-4)

    print("KERNEL_OK")
</pallas_src>

<mosaic_0001>
module attributes {stable_mosaic.version = 11 : i64} {
  func.func @_fc_relu_kernel(%arg0: i32, %arg1: memref<1x48xf32, #tpu.memory_space<vmem>>, %arg2: memref<48x512xf32, #tpu.memory_space<vmem>>, %arg3: memref<1x512xf32, #tpu.memory_space<vmem>>, %arg4: memref<1x512xf32, #tpu.memory_space<vmem>>) attributes {dimension_semantics = [#tpu.dimension_semantics<parallel>], iteration_bounds = array<i64: 1>, scalar_prefetch = 0 : i64, scratch_operands = 0 : i64, tpu.core_type = #tpu.core_type<tc>, window_params = [{transform_indices = @transform_0, window_bounds = array<i64: 1, 48>}, {pipeline_mode = #tpu.pipeline_mode<synchronous>, transform_indices = @transform_1, window_bounds = array<i64: 48, 512>}, {pipeline_mode = #tpu.pipeline_mode<synchronous>, transform_indices = @transform_2, window_bounds = array<i64: 1, 512>}, {transform_indices = @transform_3, window_bounds = array<i64: 1, 512>}]} {
    %c0 = arith.constant 0 : index
    %c0_0 = arith.constant 0 : index
    %0 = vector.load %arg1[%c0, %c0_0] : memref<1x48xf32, #tpu.memory_space<vmem>>, vector<1x48xf32>
    %c0_1 = arith.constant 0 : index
    %c0_2 = arith.constant 0 : index
    %1 = vector.load %arg2[%c0_1, %c0_2] : memref<48x512xf32, #tpu.memory_space<vmem>>, vector<48x512xf32>
    %cst = arith.constant dense<0.000000e+00> : vector<1x512xf32>
    %2 = tpu.matmul %0, %1, %cst {dimension_numbers = #tpu.dot_dimension_numbers<[1], [0], [0], [1], [0, 0, 1, 1], [], []>} : vector<1x48xf32>, vector<48x512xf32>, vector<1x512xf32> -> vector<1x512xf32>
    %c0_3 = arith.constant 0 : index
    %c0_4 = arith.constant 0 : index
    %3 = vector.load %arg3[%c0_3, %c0_4] : memref<1x512xf32, #tpu.memory_space<vmem>>, vector<1x512xf32>
    %4 = arith.addf %2, %3 : vector<1x512xf32>
    %cst_5 = arith.constant 0.000000e+00 : f32
    %5 = vector.broadcast %cst_5 : f32 to vector<1x512xf32>
    %6 = arith.maximumf %4, %5 : vector<1x512xf32>
    %c0_6 = arith.constant 0 : index
    %c0_7 = arith.constant 0 : index
    %7 = vector.load %arg4[%c0_6, %c0_7] : memref<1x512xf32, #tpu.memory_space<vmem>>, vector<1x512xf32>
    tpu.vector_store %arg4[%c0_6, %c0_7], %6 {strides = array<i32>} : memref<1x512xf32, #tpu.memory_space<vmem>>, vector<1x512xf32>,
    return
  }
  func.func @transform_0(%arg0: i32) -> (i32, i32) {
    %c0_i32 = arith.constant 0 : i32
    %c0_i32_0 = arith.constant 0 : i32
    return %arg0, %c0_i32 : i32, i32
  }
  func.func @transform_1(%arg0: i32) -> (i32, i32) {
    %c0_i32 = arith.constant 0 : i32
    %c0_i32_0 = arith.constant 0 : i32
    %c0_i32_1 = arith.constant 0 : i32
    return %c0_i32, %c0_i32_0 : i32, i32
  }
  func.func @transform_2(%arg0: i32) -> (i32, i32) {
    %c0_i32 = arith.constant 0 : i32
    %c0_i32_0 = arith.constant 0 : i32
    %c0_i32_1 = arith.constant 0 : i32
    return %c0_i32, %c0_i32_0 : i32, i32
  }
  func.func @transform_3(%arg0: i32) -> (i32, i32) {
    %c0_i32 = arith.constant 0 : i32
    %c0_i32_0 = arith.constant 0 : i32
    return %arg0, %c0_i32 : i32, i32
  }
}

</mosaic_0001>

<bundles_post_ra>
// kernel: tpu_custom_call.1
= control target key start
LH: loop header
LB: loop body
LE: loop exit
PB: predicated region body
PF: predicated region fallthrough
CT: control target
= control target key end

     0   :  { %8 = vsyncpa [#allocation3], 0  ;;  %s466_s0 = inlined_call_operand.hbm [shape: f32[1,48], index: 0, kind: input, shape index: {}]   ;;  %s467_s1 = inlined_call_operand.hbm [shape: f32[48,512], index: 1, kind: input, shape index: {}]   ;;  %s468_s2 = inlined_call_operand.vmem [shape: f32[1,512], index: 2, kind: input, shape index: {}]   ;;  %s469_s3 = inlined_call_operand.hbm [shape: f32[1,512], index: 3, kind: output, shape index: {}]  }
   0x1   :  { %9 = vsyncpa [#allocation6], 0 }
   0x2   :  { %10 = vsyncpa [#allocation4], 0  ;;  %s393_s12 = smov [#allocation2]   ;;  %s394_s14 = smov [#allocation5]  }
   0x3   :  { %s17_s13 = sshll.u32 %s393_s12, 4  ;;  %s26_s15 = sshll.u32 %s394_s14, 4  ;;  %s18_s13 = int_to_ptr.vmem [resolvable:$true] %s17_s13  ;;  %s420_s15 = int_to_ptr.vmem [resolvable:$true] %s26_s15 }
   0x4   :  { %s321_s18 = scalar_lea.hbm %s466_s0, 16 }
   0x5   :  { %p322_p0 = scmp.ne.s32.totalorder %s466_s0, %s321_s18  ;;  %p325_p1 = scmp.lt.u32.totalorder %s321_s18, %s466_s0 }
   0x7   :  { %p327_p2 = pnand %p325_p1, %p322_p0 }
   0x9   :  { %330 = shalt.err (!%p327_p2)
}
   0xa   :  { %s331_s23 = scalar_lea.vmem %s18_s13, 16  ;;  %s335_s24 = scalar_lea.vmem %s18_s13, 32 }
   0xb   :  { %p332_p3 = scmp.ne.s32.totalorder %s18_s13, %s331_s23  ;;  %p336_p4 = scmp.lt.s32.totalorder %s18_s13, %s18_s13 }
   0xc   :  { %p337_p5 = scmp.lt.s32.totalorder %s335_s24, %s331_s23 }
   0xe   :  { %p338_p6 = por %p337_p5, %p336_p4 }
  0x10   :  { %p339_p7 = pnand %p338_p6, %p332_p3 }
  0x12   :  { %342 = shalt.err (!%p339_p7)
}
  0x13   :  { %20 = dma.hbm_to_vmem [thread:$0]  %s466_s0, 16, %s18_s13, [#allocation3]  }
  0x14   :  { %s343_s29 = scalar_lea.hbm %s467_s1, 3072 }
  0x15   :  { %p344_p8 = scmp.ne.s32.totalorder %s467_s1, %s343_s29  ;;  %p347_p9 = scmp.lt.u32.totalorder %s343_s29, %s467_s1 }
  0x17   :  { %p349_p10 = pnand %p347_p9, %p344_p8 }
  0x19   :  { %352 = shalt.err (!%p349_p10)
}
  0x1a   :  { %s353_s7 = scalar_lea.vmem %s420_s15, 3072  ;;  %p358_p12 = scmp.lt.s32.totalorder %s420_s15, %s420_s15 }
  0x1b   :  { %p354_p11 = scmp.ne.s32.totalorder %s420_s15, %s353_s7  ;;  %p359_p13 = scmp.lt.s32.totalorder %s353_s7, %s353_s7 }
  0x1d   :  { %p360_p0 = por %p359_p13, %p358_p12 }
  0x1f   :  { %p361_p1 = pnand %p360_p0, %p354_p11 }
  0x21   :  { %364 = shalt.err (!%p361_p1)
}
  0x22   :  { %s395_s0 = smov 512   ;;  %s396_s8 = smov 32  }
  0x23   :  { %32 = dma.hbm_to_vmem [thread:$0]  %s467_s1, 3072, %s420_s15, [#allocation6], %s395_s0, %s395_s0, %s396_s8  }
  0x24   :  { %387 = dma.done.wait [#allocation3], 16  }
  0x25   :  { %388 = vsyncadd [#allocation3], 4294967280 }
  0x26   :  { %389 = dma.done.wait [#allocation6], 3072  }
  0x27   :  { %390 = vsyncadd [#allocation6], 4294964224  ;;  %v397_v0 = vmov 0.0   ;;  %v43_v1 = vld [vmem:[#allocation5 + $0x8] sm:$0xff]  ;;  %v45_v3 = vld [vmem:[#allocation5 + $0x18] sm:$0xff]  ;;  %vm88_vm0 = vcmask 392192   ;;  %v68_v38 = vlaneseq }
  0x28   :  { %156 = vmatprep.mubr.f32.mxu0 %v397_v0  ;;  %227 = vmatprep.mubr.f32.mxu1 %v397_v0  ;;  %v47_v2 = vld [vmem:[#allocation5 + $0x28] sm:$0xff]  ;;  %v49_v5 = vld [vmem:[#allocation5 + $0x38] sm:$0xff]  ;;  %v42_v6 = vld [vmem:[#allocation5] sm:$0xff]  ;;  %v398_v45 = vmov 1966171168  }
  0x29   :  { %v290_v4 = vpack.c.bf16 %v47_v2, %v43_v1  ;;  %v46_v7 = vld [vmem:[#allocation5 + $0x20] sm:$0xff]  ;;  %v302_v8 = vpack.c.bf16 %v49_v5, %v45_v3  ;;  %v44_v10 = vld [vmem:[#allocation5 + $0x10] sm:$0xff]  ;;  %v51_v12 = vld [vmem:[#allocation5 + $0x48] sm:$0xff]  ;;  %v69_v39 = vshrl.u32 %v68_v38, 7  ;;  %v245_v46 = vunpack.c.l.s4 %v398_v45 }
  0x2a   :  { %v292_v9 = vpack.c.bf16 %v46_v7, %v42_v6  ;;  %v48_v11 = vld [vmem:[#allocation5 + $0x30] sm:$0xff]  ;;  %v55_v14 = vld [vmem:[#allocation5 + $0x68] sm:$0xff]  ;;  %v53_v15 = vld [vmem:[#allocation5 + $0x58] sm:$0xff]  ;;  %vm269_vm1 = vcmp.lt.s32.totalorder %v68_v38, 512 }
  0x2b   :  { %291 = vmatprep.subr.bf16.mxu0 %v290_v4  ;;  %v304_v13 = vpack.c.bf16 %v48_v11, %v44_v10  ;;  %v57_v16 = vld [vmem:[#allocation5 + $0x78] sm:$0xff]  ;;  %303 = vmatprep.subr.bf16.mxu1 %v302_v8  ;;  %v294_v17 = vpack.c.bf16 %v55_v14, %v51_v12  ;;  %v50_v19 = vld [vmem:[#allocation5 + $0x40] sm:$0xff]  ;;  %v52_v21 = vld [vmem:[#allocation5 + $0x50] sm:$0xff]  ;;  %v70_v40 = vsub.s32 0, %v69_v39  ;;  %v78_v42 = vsub.s32 2, %v69_v39 }
  0x2c   :  { %293 = vmatpush1.bf16.msra.mxu0 %v292_v9  ;;  %v306_v18 = vpack.c.bf16 %v57_v16, %v53_v15  ;;  %v54_v20 = vld [vmem:[#allocation5 + $0x60] sm:$0xff]  ;;  %v56_v23 = vld [vmem:[#allocation5 + $0x70] sm:$0xff]  ;;  %v59_v24 = vld [vmem:[#allocation5 + $0x88] sm:$0xff]  ;;  %v74_v43 = vsub.s32 1, %v69_v39  ;;  %v82_v44 = vsub.s32 3, %v69_v39  ;;  %v246_v52 = vunpack.c.0.s8 %v245_v46 }
  0x2d   :  { %305 = vmatpush1.bf16.msra.mxu1 %v304_v13  ;;  %v296_v22 = vpack.c.bf16 %v54_v20, %v50_v19  ;;  %v63_v25 = vld [vmem:[#allocation5 + $0xa8] sm:$0xff]  ;;  %295 = vmatprep.subr.bf16.mxu0 %v294_v17  ;;  %v308_v26 = vpack.c.bf16 %v56_v23, %v52_v21  ;;  %v61_v28 = vld [vmem:[#allocation5 + $0x98] sm:$0xff]  ;;  %v58_v30 = vld [vmem:[#allocation5 + $0x80] sm:$0xff] }
  0x2e   :  { %307 = vmatprep.subr.bf16.mxu1 %v306_v18  ;;  %v298_v27 = vpack.c.bf16 %v63_v25, %v59_v24  ;;  %v65_v29 = vld [vmem:[#allocation5 + $0xb8] sm:$0xff]  ;;  %v62_v32 = vld [vmem:[#allocation5 + $0xa0] sm:$0xff]  ;;  %v60_v33 = vld [vmem:[#allocation5 + $0x90] sm:$0xff]  ;;  %v249_v63 = vsub.s32 %v246_v52, %v69_v39 }
  0x2f   :  { %v310_v31 = vpack.c.bf16 %v65_v29, %v61_v28  ;;  %v64_v34 = vld [vmem:[#allocation5 + $0xb0] sm:$0xff]  ;;  %v300_v35 = vpack.c.bf16 %v62_v32, %v58_v30  ;;  %v41_v37 = vld [vmem:[#allocation2] sm:$0x1] }
  0x30   :  { %297 = vmatpush1.bf16.msra.mxu0 %v296_v22  ;;  %v312_v36 = vpack.c.bf16 %v64_v34, %v60_v33  ;;  %v66_v41 = vld [vmem:[%s468_s2] sm:$0xf]  ;;  %s399_s2 = smov [#allocation7]  }
  0x31   :  { %309 = vmatpush1.bf16.msra.mxu1 %v308_v26  ;;  %299 = vmatprep.subr.bf16.mxu0 %v298_v27  ;;  %v71_v47 = vrot.slane %v66_v41, %v70_v40  ;;  %v79_v48 = vrot.slane %v66_v41, %v78_v42  ;;  %v75_v49 = vrot.slane %v66_v41, %v74_v43  ;;  %s278_s12 = sshll.u32 %s399_s2, 4  ;;  %s279_s12 = int_to_ptr.vmem [resolvable:$true] %s278_s12 }
  0x32   :  { %311 = vmatprep.subr.bf16.mxu1 %v310_v31  ;;  %v83_v50 = vrot.slane %v66_v41, %v82_v44  ;;  %s365_s13 = scalar_lea.vmem %s279_s12, 64  ;;  %p370_p3 = scmp.lt.s32.totalorder %s279_s12, %s279_s12 }
  0x33   :  { %p366_p2 = scmp.ne.s32.totalorder %s279_s12, %s365_s13  ;;  %p371_p4 = scmp.lt.s32.totalorder %s365_s13, %s365_s13 }
  0x34   :  { %301 = vmatpush1.bf16.msra.mxu0 %v300_v35 }
  0x35   :  { %313 = vmatpush1.bf16.msra.mxu1 %v312_v36  ;;  %p372_p5 = por %p371_p4, %p370_p3 }
  0x37   :  { %288 = vmatmul.mubr.msk.f32.vlgmr.msra.gmra.mrb[0].mxu0 %vm88_vm0, %v41_v37  ;;  %p373_p6 = pnand %p372_p5, %p366_p2 }
  0x38   :  { %289 = vmatmul.mubr.msk.f32.vlgmr.msra.gmra.mrb[0].mxu1 %vm88_vm0, %v41_v37 }
 0x10a   :  { %v158_v51 = vpop.f32.mrb[0].mxu0 }
 0x10b   :  { %v159_v53 = vadd.f32 %v158_v51, %v71_v47  ;;  %v229_v54 = vpop.f32.mrb[0].mxu1  ;;  %v160_v55 = vpop.f32.mrb[1].mxu0 }
 0x10c   :  { %v230_v56 = vadd.f32 %v229_v54, %v79_v48  ;;  %v161_v57 = vadd.f32 %v160_v55, %v75_v49  ;;  %v231_v58 = vpop.f32.mrb[1].mxu1 }
 0x10d   :  { %v234_v59 = vmax.f32 %v159_v53, 0.0  ;;  %v232_v60 = vadd.f32 %v231_v58, %v83_v50 }
 0x10e   :  { %v236_v61 = vmax.f32 %v230_v56, 0.0  ;;  %v235_v62 = vmax.f32 %v161_v57, 0.0 }
 0x10f   :  { %v237_v0 = vmax.f32 %v232_v60, 0.0 }
 0x110   :  { %v242_v1 = vcombine.low %v234_v59, %v235_v62 }
 0x111   :  { %v243_v2 = vcombine.low %v236_v61, %v237_v0 }
 0x112   :  { %v250_v3 = vrot.slane %v242_v1, %v249_v63 }
 0x113   :  { %v257_v4 = vrot.slane %v243_v2, %v249_v63 }
 0x115   :  { %v258_v5 = vcombine.low %v250_v3, %v257_v4 }
 0x117   :  { %v265_v6 = vrot.slane %v258_v5, %v249_v63 }
 0x119   :  { %271 = vst.msk [vmem:[#allocation7] sm:$0xf] %vm269_vm1, %v265_v6 }
 0x11a   :  { %376 = shalt.err (!%p373_p6)
}
 0x11b   :  { %s377_s16 = scalar_lea.hbm %s469_s3, 64 }
 0x11c   :  { %p378_p7 = scmp.ne.s32.totalorder %s469_s3, %s377_s16  ;;  %p381_p8 = scmp.lt.u32.totalorder %s377_s16, %s469_s3 }
 0x11e   :  { %p383_p9 = pnand %p381_p8, %p378_p7 }
 0x120   :  { %386 = shalt.err (!%p383_p9)
}
 0x121   :  { %281 = dma.vmem_to_hbm [thread:$0]  %s279_s12, 64, %s469_s3, [#allocation4]  }
 0x122   :  { %391 = dma.done.wait [#allocation4], 64  }
 0x123   :  { %392 = vsyncadd [#allocation4], 4294967232 }
 0x124   :  { %285 = vsyncpa [#allocation3], 1 }
 0x125   :  { %286 = vsyncpa [#allocation6], 1 }
 0x126   :  { %287 = vsyncpa [#allocation4], 1 }

</bundles_post_ra>
